<compile_context>
chip_gen: v7x
topology: tpu7x:2x2x1
jax: 0.10.0
libtpu: 0.0.40
codegen_flags: <defaults>
</compile_context>

<pallas_src>
import functools

import jax
import jax.numpy as jnp
from jax import lax
from jax.experimental import pallas as pl
from jax.experimental.pallas import tpu as pltpu


# ----------------------------- Pallas kernel --------------------------------
def _char_rnn_kernel(prex_ref, whh_ref, wfc_ref, bfc_ref, out_ref, *,
                     seq_len, batch):
    """Serial tanh recurrence (only dependent op) + one batched FC matmul.

    prex_ref : [T*B, H]  f32   fused (embedding @ W_ih^T + b_ih + b_hh),
                               time-major rows (row = t*B + b)
    whh_ref  : [H, H]    mmdt  (= W_hh^T), matmul dtype (bf16 or f32)
    wfc_ref  : [H, Vp]   mmdt  (= W_fc^T), zero-padded to Vp lanes
    bfc_ref  : [1, Vp]   f32   zero-padded FC bias
    out_ref  : [B*T, Vp] f32   lane-dense logits, batch-major rows (row = b*T + t)
    """
    T, B = seq_len, batch
    H = whh_ref.shape[0]

    pre = prex_ref[...]                       # whole [T*B, H] tile, loaded once
    whh = whh_ref[...]                        # loop-invariant, loaded once
    mm_dtype = whh.dtype

    # ---- serial recurrence: only h @ W_hh^T + tanh on the critical path ----
    # Small static T -> fully unrolled Python loop; hidden states stay in
    # registers (no per-step masked stores).  Production T: T-chunk grid +
    # lax.fori_loop(unroll=4..8) instead.
    h = jnp.zeros((B, H), jnp.float32)        # PyTorch default h_0 = 0
    hs = []
    for t in range(T):
        z = pre[t * B:(t + 1) * B, :] + jnp.dot(
            h.astype(mm_dtype), whh, preferred_element_type=jnp.float32)
        h = jnp.tanh(z)                       # carried state / tanh stay f32
        hs.append(h)

    # ---- gather hidden states into caller (batch-major) row order ----------
    # Plain 2-D axis-0 concatenates of register values (no 3-D reshape /
    # relayout inside the kernel): row b*T + t  <-  h_t[b, :].
    hs_flat = jnp.concatenate(
        [jnp.concatenate([h_t[b:b + 1, :] for h_t in hs], axis=0)
         for b in range(B)],
        axis=0)                               # [B*T, H]

    # ---- one batched output projection + single lane-dense store -----------
    logits = jnp.dot(hs_flat.astype(mm_dtype), wfc_ref[...],
                     preferred_element_type=jnp.float32) + bfc_ref[...]
    out_ref[...] = logits.astype(out_ref.dtype)


# ----------------------------- wrapper ---------------------------------------
def char_rnn_forward(tokens, params, matmul_dtype=jnp.bfloat16):
    """tokens: int32 [B, T]  ->  logits float32 [B, T, V]"""
    emb_table = params["embedding"].astype(jnp.float32)   # [V, E]
    w_ih = params["w_ih"].astype(jnp.float32)             # [H, E]
    w_hh = params["w_hh"]                                  # [H, H]
    b_ih = params["b_ih"].astype(jnp.float32)              # [H]
    b_hh = params["b_hh"].astype(jnp.float32)              # [H]
    w_fc = params["w_fc"]                                   # [V, H]
    b_fc = params["b_fc"].astype(jnp.float32)               # [V]

    B, T = tokens.shape
    V, E = emb_table.shape
    H = w_hh.shape[0]
    Vp = ((V + 127) // 128) * 128            # lane-dense padded vocab width

    # Fuse embedding + input projection (exact: both linear in one-hot token),
    # then gather the fused table in time-major flat order (row = t*B + b).
    # Only token indices are "transposed" -- no activation transposes anywhere.
    pre_table = emb_table @ w_ih.T + (b_ih + b_hh)                    # [V, H]
    pre_x = jnp.take(pre_table, tokens.T.reshape(T * B), axis=0)      # [T*B, H]

    # MXU operands in matmul dtype; zero-pad FC weight/bias so padded logits
    # are exactly zero and never leak.
    whh_t = jnp.transpose(w_hh).astype(matmul_dtype)                  # [H, H]
    wfc_t = jnp.zeros((H, Vp), matmul_dtype).at[:, :V].set(
        jnp.transpose(w_fc).astype(matmul_dtype))                     # [H, Vp]
    bfc = jnp.zeros((1, Vp), jnp.float32).at[:, :V].set(b_fc)         # [1, Vp]

    vmem = pl.BlockSpec(memory_space=pltpu.MemorySpace.VMEM)
    kernel = functools.partial(_char_rnn_kernel, seq_len=T, batch=B)

    out_flat = pl.pallas_call(
        kernel,
        out_shape=jax.ShapeDtypeStruct((B * T, Vp), jnp.float32),
        in_specs=[vmem] * 4,
        out_specs=vmem,
        compiler_params=pltpu.CompilerParams(
            vmem_limit_bytes=32 * 1024 * 1024),
    )(pre_x, whh_t, wfc_t, bfc)

    # Output is already in caller (batch-major) order: free reshape + vocab slice.
    return out_flat.reshape(B, T, Vp)[:, :, :V]


# ----------------------------- reference (pure JAX) --------------------------
def char_rnn_ref(tokens, params):
    emb = jnp.take(params["embedding"], tokens, axis=0)        # [B, T, E]
    B, T, E = emb.shape
    H = params["w_hh"].shape[0]

    def step(h, x_t):
        h_new = jnp.tanh(x_t @ params["w_ih"].T + params["b_ih"]
                         + h @ params["w_hh"].T + params["b_hh"])
        return h_new, h_new

    h0 = jnp.zeros((B, H), jnp.float32)
    _, hs = lax.scan(step, h0, jnp.transpose(emb, (1, 0, 2)))   # [T, B, H]
    hs = jnp.transpose(hs, (1, 0, 2))                           # [B, T, H]
    return hs @ params["w_fc"].T + params["b_fc"]


# ----------------------------- main ------------------------------------------
if __name__ == "__main__":
    vocab_size = 32
    hidden_size = 32
    embed_dim = 16
    B, T = 2, 8

    key = jax.random.PRNGKey(0)
    ks = jax.random.split(key, 8)

    # Deterministic init, mimicking PyTorch default initializers.
    k_rnn = 1.0 / jnp.sqrt(hidden_size)
    k_fc = 1.0 / jnp.sqrt(hidden_size)
    params = {
        "embedding": jax.random.normal(ks[0], (vocab_size, embed_dim), jnp.float32),
        "w_ih": jax.random.uniform(ks[1], (hidden_size, embed_dim), jnp.float32, -k_rnn, k_rnn),
        "w_hh": jax.random.uniform(ks[2], (hidden_size, hidden_size), jnp.float32, -k_rnn, k_rnn),
        "b_ih": jax.random.uniform(ks[3], (hidden_size,), jnp.float32, -k_rnn, k_rnn),
        "b_hh": jax.random.uniform(ks[4], (hidden_size,), jnp.float32, -k_rnn, k_rnn),
        "w_fc": jax.random.uniform(ks[5], (vocab_size, hidden_size), jnp.float32, -k_fc, k_fc),
        "b_fc": jax.random.uniform(ks[6], (vocab_size,), jnp.float32, -k_fc, k_fc),
    }

    tokens = jax.random.randint(ks[7], (B, T), 0, vocab_size, dtype=jnp.int32)

    ref = jax.block_until_ready(char_rnn_ref(tokens, params))

    # Exactness check: f32 MXU operands must match the reference tightly.
    out_f32 = jax.block_until_ready(
        char_rnn_forward(tokens, params, matmul_dtype=jnp.float32))
    assert out_f32.shape == (B, T, vocab_size), out_f32.shape
    assert jnp.allclose(out_f32, ref, atol=1e-5, rtol=1e-5), \
        float(jnp.max(jnp.abs(out_f32 - ref)))

    # Production config: bf16 MXU operands (f32 carried state / accumulation).
    out_bf16 = jax.block_until_ready(char_rnn_forward(tokens, params))
    assert out_bf16.shape == (B, T, vocab_size), out_bf16.shape
    assert jnp.allclose(out_bf16, ref, atol=1e-1), \
        float(jnp.max(jnp.abs(out_bf16 - ref)))

    print("KERNEL_OK")
</pallas_src>

<mosaic_0001>
module attributes {stable_mosaic.version = 11 : i64} {
  func.func @_char_rnn_kernel(%arg0: memref<16x32xf32, #tpu.memory_space<vmem>>, %arg1: memref<32x32xf32, #tpu.memory_space<vmem>>, %arg2: memref<32x128xf32, #tpu.memory_space<vmem>>, %arg3: memref<1x128xf32, #tpu.memory_space<vmem>>, %arg4: memref<16x128xf32, #tpu.memory_space<vmem>>) attributes {dimension_semantics = [], scalar_prefetch = 0 : i64, scratch_operands = 0 : i64, tpu.core_type = #tpu.core_type<tc>} {
    %c0 = arith.constant 0 : index
    %c0_0 = arith.constant 0 : index
    %0 = vector.load %arg0[%c0, %c0_0] : memref<16x32xf32, #tpu.memory_space<vmem>>, vector<16x32xf32>
    %c0_1 = arith.constant 0 : index
    %c0_2 = arith.constant 0 : index
    %1 = vector.load %arg1[%c0_1, %c0_2] : memref<32x32xf32, #tpu.memory_space<vmem>>, vector<32x32xf32>
    %cst = arith.constant 0.000000e+00 : f32
    %2 = vector.broadcast %cst : f32 to vector<2x32xf32>
    %3 = vector.extract_strided_slice %0 {offsets = [0, 0], sizes = [2, 32], strides = [1, 1]} : vector<16x32xf32> to vector<2x32xf32>
    %cst_3 = arith.constant dense<0.000000e+00> : vector<2x32xf32>
    %4 = tpu.matmul %2, %1, %cst_3 {dimension_numbers = #tpu.dot_dimension_numbers<[1], [0], [0], [1], [0, 0, 1, 1], [], []>} : vector<2x32xf32>, vector<32x32xf32>, vector<2x32xf32> -> vector<2x32xf32>
    %5 = arith.addf %3, %4 : vector<2x32xf32>
    %6 = math.tanh %5 : vector<2x32xf32>
    %7 = vector.extract_strided_slice %0 {offsets = [2, 0], sizes = [2, 32], strides = [1, 1]} : vector<16x32xf32> to vector<2x32xf32>
    %cst_4 = arith.constant dense<0.000000e+00> : vector<2x32xf32>
    %8 = tpu.matmul %6, %1, %cst_4 {dimension_numbers = #tpu.dot_dimension_numbers<[1], [0], [0], [1], [0, 0, 1, 1], [], []>} : vector<2x32xf32>, vector<32x32xf32>, vector<2x32xf32> -> vector<2x32xf32>
    %9 = arith.addf %7, %8 : vector<2x32xf32>
    %10 = math.tanh %9 : vector<2x32xf32>
    %11 = vector.extract_strided_slice %0 {offsets = [4, 0], sizes = [2, 32], strides = [1, 1]} : vector<16x32xf32> to vector<2x32xf32>
    %cst_5 = arith.constant dense<0.000000e+00> : vector<2x32xf32>
    %12 = tpu.matmul %10, %1, %cst_5 {dimension_numbers = #tpu.dot_dimension_numbers<[1], [0], [0], [1], [0, 0, 1, 1], [], []>} : vector<2x32xf32>, vector<32x32xf32>, vector<2x32xf32> -> vector<2x32xf32>
    %13 = arith.addf %11, %12 : vector<2x32xf32>
    %14 = math.tanh %13 : vector<2x32xf32>
    %15 = vector.extract_strided_slice %0 {offsets = [6, 0], sizes = [2, 32], strides = [1, 1]} : vector<16x32xf32> to vector<2x32xf32>
    %cst_6 = arith.constant dense<0.000000e+00> : vector<2x32xf32>
    %16 = tpu.matmul %14, %1, %cst_6 {dimension_numbers = #tpu.dot_dimension_numbers<[1], [0], [0], [1], [0, 0, 1, 1], [], []>} : vector<2x32xf32>, vector<32x32xf32>, vector<2x32xf32> -> vector<2x32xf32>
    %17 = arith.addf %15, %16 : vector<2x32xf32>
    %18 = math.tanh %17 : vector<2x32xf32>
    %19 = vector.extract_strided_slice %0 {offsets = [8, 0], sizes = [2, 32], strides = [1, 1]} : vector<16x32xf32> to vector<2x32xf32>
    %cst_7 = arith.constant dense<0.000000e+00> : vector<2x32xf32>
    %20 = tpu.matmul %18, %1, %cst_7 {dimension_numbers = #tpu.dot_dimension_numbers<[1], [0], [0], [1], [0, 0, 1, 1], [], []>} : vector<2x32xf32>, vector<32x32xf32>, vector<2x32xf32> -> vector<2x32xf32>
    %21 = arith.addf %19, %20 : vector<2x32xf32>
    %22 = math.tanh %21 : vector<2x32xf32>
    %23 = vector.extract_strided_slice %0 {offsets = [10, 0], sizes = [2, 32], strides = [1, 1]} : vector<16x32xf32> to vector<2x32xf32>
    %cst_8 = arith.constant dense<0.000000e+00> : vector<2x32xf32>
    %24 = tpu.matmul %22, %1, %cst_8 {dimension_numbers = #tpu.dot_dimension_numbers<[1], [0], [0], [1], [0, 0, 1, 1], [], []>} : vector<2x32xf32>, vector<32x32xf32>, vector<2x32xf32> -> vector<2x32xf32>
    %25 = arith.addf %23, %24 : vector<2x32xf32>
    %26 = math.tanh %25 : vector<2x32xf32>
    %27 = vector.extract_strided_slice %0 {offsets = [12, 0], sizes = [2, 32], strides = [1, 1]} : vector<16x32xf32> to vector<2x32xf32>
    %cst_9 = arith.constant dense<0.000000e+00> : vector<2x32xf32>
    %28 = tpu.matmul %26, %1, %cst_9 {dimension_numbers = #tpu.dot_dimension_numbers<[1], [0], [0], [1], [0, 0, 1, 1], [], []>} : vector<2x32xf32>, vector<32x32xf32>, vector<2x32xf32> -> vector<2x32xf32>
    %29 = arith.addf %27, %28 : vector<2x32xf32>
    %30 = math.tanh %29 : vector<2x32xf32>
    %31 = vector.extract_strided_slice %0 {offsets = [14, 0], sizes = [2, 32], strides = [1, 1]} : vector<16x32xf32> to vector<2x32xf32>
    %cst_10 = arith.constant dense<0.000000e+00> : vector<2x32xf32>
    %32 = tpu.matmul %30, %1, %cst_10 {dimension_numbers = #tpu.dot_dimension_numbers<[1], [0], [0], [1], [0, 0, 1, 1], [], []>} : vector<2x32xf32>, vector<32x32xf32>, vector<2x32xf32> -> vector<2x32xf32>
    %33 = arith.addf %31, %32 : vector<2x32xf32>
    %34 = math.tanh %33 : vector<2x32xf32>
    %35 = vector.extract_strided_slice %6 {offsets = [0, 0], sizes = [1, 32], strides = [1, 1]} : vector<2x32xf32> to vector<1x32xf32>
    %36 = vector.extract_strided_slice %10 {offsets = [0, 0], sizes = [1, 32], strides = [1, 1]} : vector<2x32xf32> to vector<1x32xf32>
    %37 = vector.extract_strided_slice %14 {offsets = [0, 0], sizes = [1, 32], strides = [1, 1]} : vector<2x32xf32> to vector<1x32xf32>
    %38 = vector.extract_strided_slice %18 {offsets = [0, 0], sizes = [1, 32], strides = [1, 1]} : vector<2x32xf32> to vector<1x32xf32>
    %39 = vector.extract_strided_slice %22 {offsets = [0, 0], sizes = [1, 32], strides = [1, 1]} : vector<2x32xf32> to vector<1x32xf32>
    %40 = vector.extract_strided_slice %26 {offsets = [0, 0], sizes = [1, 32], strides = [1, 1]} : vector<2x32xf32> to vector<1x32xf32>
    %41 = vector.extract_strided_slice %30 {offsets = [0, 0], sizes = [1, 32], strides = [1, 1]} : vector<2x32xf32> to vector<1x32xf32>
    %42 = vector.extract_strided_slice %34 {offsets = [0, 0], sizes = [1, 32], strides = [1, 1]} : vector<2x32xf32> to vector<1x32xf32>
    %43 = tpu.concatenate %35, %36, %37, %38, %39, %40, %41, %42 in 0 : vector<1x32xf32>, vector<1x32xf32>, vector<1x32xf32>, vector<1x32xf32>, vector<1x32xf32>, vector<1x32xf32>, vector<1x32xf32>, vector<1x32xf32> -> vector<8x32xf32>
    %44 = vector.extract_strided_slice %6 {offsets = [1, 0], sizes = [1, 32], strides = [1, 1]} : vector<2x32xf32> to vector<1x32xf32>
    %45 = vector.extract_strided_slice %10 {offsets = [1, 0], sizes = [1, 32], strides = [1, 1]} : vector<2x32xf32> to vector<1x32xf32>
    %46 = vector.extract_strided_slice %14 {offsets = [1, 0], sizes = [1, 32], strides = [1, 1]} : vector<2x32xf32> to vector<1x32xf32>
    %47 = vector.extract_strided_slice %18 {offsets = [1, 0], sizes = [1, 32], strides = [1, 1]} : vector<2x32xf32> to vector<1x32xf32>
    %48 = vector.extract_strided_slice %22 {offsets = [1, 0], sizes = [1, 32], strides = [1, 1]} : vector<2x32xf32> to vector<1x32xf32>
    %49 = vector.extract_strided_slice %26 {offsets = [1, 0], sizes = [1, 32], strides = [1, 1]} : vector<2x32xf32> to vector<1x32xf32>
    %50 = vector.extract_strided_slice %30 {offsets = [1, 0], sizes = [1, 32], strides = [1, 1]} : vector<2x32xf32> to vector<1x32xf32>
    %51 = vector.extract_strided_slice %34 {offsets = [1, 0], sizes = [1, 32], strides = [1, 1]} : vector<2x32xf32> to vector<1x32xf32>
    %52 = tpu.concatenate %44, %45, %46, %47, %48, %49, %50, %51 in 0 : vector<1x32xf32>, vector<1x32xf32>, vector<1x32xf32>, vector<1x32xf32>, vector<1x32xf32>, vector<1x32xf32>, vector<1x32xf32>, vector<1x32xf32> -> vector<8x32xf32>
    %53 = tpu.concatenate %43, %52 in 0 : vector<8x32xf32>, vector<8x32xf32> -> vector<16x32xf32>
    %c0_11 = arith.constant 0 : index
    %c0_12 = arith.constant 0 : index
    %54 = vector.load %arg2[%c0_11, %c0_12] : memref<32x128xf32, #tpu.memory_space<vmem>>, vector<32x128xf32>
    %cst_13 = arith.constant dense<0.000000e+00> : vector<16x128xf32>
    %55 = tpu.matmul %53, %54, %cst_13 {dimension_numbers = #tpu.dot_dimension_numbers<[1], [0], [0], [1], [0, 0, 1, 1], [], []>} : vector<16x32xf32>, vector<32x128xf32>, vector<16x128xf32> -> vector<16x128xf32>
    %c0_14 = arith.constant 0 : index
    %c0_15 = arith.constant 0 : index
    %56 = vector.load %arg3[%c0_14, %c0_15] : memref<1x128xf32, #tpu.memory_space<vmem>>, vector<1x128xf32>
    %57 = vector.broadcast %56 : vector<1x128xf32> to vector<16x128xf32>
    %58 = arith.addf %55, %57 : vector<16x128xf32>
    %c0_16 = arith.constant 0 : index
    %c0_17 = arith.constant 0 : index
    %59 = vector.load %arg4[%c0_16, %c0_17] : memref<16x128xf32, #tpu.memory_space<vmem>>, vector<16x128xf32>
    tpu.vector_store %arg4[%c0_16, %c0_17], %58 {strides = array<i32>} : memref<16x128xf32, #tpu.memory_space<vmem>>, vector<16x128xf32>,
    return
  }
}

</mosaic_0001>

<bundles_post_ra>
// kernel: tpu_custom_call.1
= control target key start
LH: loop header
LB: loop body
LE: loop exit
PB: predicated region body
PF: predicated region fallthrough
CT: control target
= control target key end

     0   :  { %9 = vsyncpa [#allocation3], 0  ;;  %s1346_s0 = inlined_call_operand.hbm [shape: f32[16,32], index: 0, kind: input, shape index: {}]   ;;  %s1347_s1 = inlined_call_operand.hbm [shape: f32[32,32], index: 1, kind: input, shape index: {}]   ;;  %s1348_s2 = inlined_call_operand.hbm [shape: f32[32,128], index: 2, kind: input, shape index: {}]   ;;  %s1349_s3 = inlined_call_operand.vmem [shape: f32[1,128], index: 3, kind: input, shape index: {}]   ;;  %s1350_s4 = inlined_call_operand.hbm [shape: f32[16,128], index: 4, kind: output, shape index: {}]  }
   0x1   :  { %10 = vsyncpa [#allocation6], 0 }
   0x2   :  { %11 = vsyncpa [#allocation4], 0  ;;  %s1180_s15 = smov [#allocation5]   ;;  %s1181_s17 = smov [#allocation2]  }
   0x3   :  { %s29_s16 = sshll.u32 %s1180_s15, 4  ;;  %s17_s18 = sshll.u32 %s1181_s17, 4  ;;  %s30_s16 = int_to_ptr.vmem [resolvable:$true] %s29_s16  ;;  %s1214_s18 = int_to_ptr.vmem [resolvable:$true] %s17_s18 }
   0x4   :  { %s1086_s21 = scalar_lea.hbm %s1347_s1, 512 }
   0x5   :  { %p1087_p0 = scmp.ne.s32.totalorder %s1347_s1, %s1086_s21  ;;  %p1090_p1 = scmp.lt.u32.totalorder %s1086_s21, %s1347_s1 }
   0x7   :  { %p1092_p2 = pnand %p1090_p1, %p1087_p0 }
   0x9   :  { %1095 = shalt.err (!%p1092_p2)
}
   0xa   :  { %s1096_s26 = scalar_lea.vmem %s30_s16, 512  ;;  %p1101_p4 = scmp.lt.s32.totalorder %s30_s16, %s30_s16 }
   0xb   :  { %p1097_p3 = scmp.ne.s32.totalorder %s30_s16, %s1096_s26  ;;  %p1102_p5 = scmp.lt.s32.totalorder %s1096_s26, %s1096_s26 }
   0xd   :  { %p1103_p6 = por %p1102_p5, %p1101_p4 }
   0xf   :  { %p1104_p7 = pnand %p1103_p6, %p1097_p3 }
  0x11   :  { %1107 = shalt.err (!%p1104_p7)
}
  0x12   :  { %s1182_s27 = smov 128   ;;  %s1183_s28 = smov 8  }
  0x13   :  { %35 = dma.hbm_to_vmem [thread:$0]  %s1347_s1, 512, %s30_s16, [#allocation6], %s1182_s27, %s1182_s27, %s1183_s28  }
  0x14   :  { %s1108_s7 = scalar_lea.hbm %s1346_s0, 256 }
  0x15   :  { %p1109_p8 = scmp.ne.s32.totalorder %s1346_s0, %s1108_s7  ;;  %p1112_p9 = scmp.lt.u32.totalorder %s1108_s7, %s1346_s0 }
  0x17   :  { %p1114_p10 = pnand %p1112_p9, %p1109_p8 }
  0x19   :  { %1117 = shalt.err (!%p1114_p10)
}
  0x1a   :  { %s1118_s12 = scalar_lea.vmem %s1214_s18, 256  ;;  %p1123_p12 = scmp.lt.s32.totalorder %s1214_s18, %s1214_s18 }
  0x1b   :  { %p1119_p11 = scmp.ne.s32.totalorder %s1214_s18, %s1118_s12  ;;  %p1124_p13 = scmp.lt.s32.totalorder %s1118_s12, %s1118_s12 }
  0x1d   :  { %p1125_p0 = por %p1124_p13, %p1123_p12 }
  0x1f   :  { %p1126_p1 = pnand %p1125_p0, %p1119_p11 }
  0x21   :  { %1129 = shalt.err (!%p1126_p1)
}
  0x22   :  { %23 = dma.hbm_to_vmem [thread:$0]  %s1346_s0, 256, %s1214_s18, [#allocation3], %s1182_s27, %s1182_s27, %s1183_s28  }
  0x23   :  { %s1184_s14 = smov [#allocation7]   ;;  %s1130_s19 = scalar_lea.hbm %s1348_s2, 512 }
  0x24   :  { %s41_s15 = sshll.u32 %s1184_s14, 4  ;;  %p1131_p2 = scmp.ne.s32.totalorder %s1348_s2, %s1130_s19  ;;  %s42_s15 = int_to_ptr.vmem [resolvable:$true] %s41_s15 }
  0x25   :  { %p1134_p3 = scmp.lt.u32.totalorder %s1130_s19, %s1348_s2 }
  0x27   :  { %p1136_p4 = pnand %p1134_p3, %p1131_p2 }
  0x29   :  { %1139 = shalt.err (!%p1136_p4)
}
  0x2a   :  { %s1140_s24 = scalar_lea.vmem %s42_s15, 512  ;;  %p1145_p6 = scmp.lt.s32.totalorder %s42_s15, %s42_s15 }
  0x2b   :  { %p1141_p5 = scmp.ne.s32.totalorder %s42_s15, %s1140_s24  ;;  %p1146_p7 = scmp.lt.s32.totalorder %s1140_s24, %s1140_s24 }
  0x2d   :  { %p1147_p8 = por %p1146_p7, %p1145_p6 }
  0x2f   :  { %p1148_p9 = pnand %p1147_p8, %p1141_p5 }
  0x31   :  { %1151 = shalt.err (!%p1148_p9)
}
  0x32   :  { %47 = dma.hbm_to_vmem [thread:$0]  %s1348_s2, 512, %s42_s15, [#allocation6], %s1182_s27, %s1182_s27, %s1183_s28  }
  0x33   :  { %1174 = dma.done.wait [#allocation3], 256  }
  0x34   :  { %1175 = vsyncadd [#allocation3], 4294967040 }
  0x35   :  { %1176 = dma.done.wait [#allocation6], 1024  }
  0x36   :  { %1177 = vsyncadd [#allocation6], 4294966272  ;;  %v1185_v0 = vmov 0.0|0.0   ;;  %vm1186_vm0 = vmmov 0   ;;  %v1187_v1 = vmov 0.0   ;;  %v61_v2 = vld [vmem:[#allocation5] sm:$0xff] }
  0x37   :  { %1005 = vmatprep.subr.bf16.mxu0 %v1185_v0  ;;  %914 = vmatprep.mubr.msk.f32.mxu0 %vm1186_vm0, %v1187_v1  ;;  %v62_v3 = vld [vmem:[#allocation5 + $0x8] sm:$0xff]  ;;  %v63_v4 = vld [vmem:[#allocation5 + $0x10] sm:$0xff]  ;;  %v64_v6 = vld [vmem:[#allocation5 + $0x18] sm:$0xff]  ;;  %vm65_vm1 = vcmask 261120   ;;  %vm704_vm2 = vcmask 1040384   ;;  %vm706_vm3 = vcmask 1041408  }
  0x38   :  { %1011 = vmatprep.subr.bf16.mxu1 %v1185_v0  ;;  %925 = vmatprep.mubr.msk.f32.mxu1 %vm1186_vm0, %v1187_v1  ;;  %v1272_v5 = vpack.c.bf16 %v62_v3, %v61_v2  ;;  %v1275_v7 = vpack.c.bf16 %v64_v6, %v63_v4  ;;  %v59_v8 = vld [vmem:[#allocation2] sm:$0xff]  ;;  %vm708_vm4 = vcmask 1042432   ;;  %v60_v43 = vld [vmem:[#allocation2 + $0x8] sm:$0xff]  ;;  %vm710_vm5 = vcmask 1043456   ;;  %s1188_s26 = smov [#allocation8]  }
  0x39   :  { %vm712_vm6 = vcmask 1044480   ;;  %vm714_vm7 = vcmask 1045504   ;;  %vm716_vm8 = vcmask 1046528   ;;  %s837_s29 = sshll.u32 %s1188_s26, 4  ;;  %s838_s29 = int_to_ptr.vmem [resolvable:$true] %s837_s29 }
  0x3a   :  { %1007 = vmatpush3.bf16.msra.mxu0 %v1272_v5  ;;  %1013 = vmatpush3.bf16.msra.mxu1 %v1272_v5  ;;  %s1152_s30 = scalar_lea.vmem %s838_s29, 256  ;;  %p1157_p11 = scmp.lt.s32.totalorder %s838_s29, %s838_s29 }
  0x3b   :  { %1008 = vmatprep.subr.bf16.mxu0 %v1185_v0  ;;  %1014 = vmatprep.subr.bf16.mxu1 %v1185_v0  ;;  %p1153_p10 = scmp.ne.s32.totalorder %s838_s29, %s1152_s30  ;;  %p1158_p12 = scmp.lt.s32.totalorder %s1152_s30, %s1152_s30 }
  0x3d   :  { %p1159_p13 = por %p1158_p12, %p1157_p11 }
  0x3e   :  { %1010 = vmatpush3.bf16.msra.mxu0 %v1275_v7  ;;  %1016 = vmatpush3.bf16.msra.mxu1 %v1275_v7 }
  0x3f   :  { %1017 = vmatprep.subr.bf16.mxu0 %v1185_v0  ;;  %1023 = vmatprep.subr.bf16.mxu1 %v1185_v0  ;;  %p1160_p0 = pnand %p1159_p13, %p1153_p10 }
  0x41   :  { %915 = vmatmul.mubr.f32.vlgmr.msra.gmra.mrb[0].mxu0 %v1187_v1 }
  0x42   :  { %1019 = vmatpush3.bf16.msra.mxu0 %v1272_v5  ;;  %936 = vmatprep.mubr.msk.f32.mxu0 %vm1186_vm0, %v1187_v1 }
  0x43   :  { %1020 = vmatprep.subr.bf16.mxu0 %v1185_v0 }
  0x46   :  { %1022 = vmatpush3.bf16.msra.mxu0 %v1275_v7 }
  0x47   :  { %1029 = vmatprep.subr.bf16.mxu0 %v1185_v0 }
 0x114   :  { %v135_v9 = vpop.f32.mrb[0].mxu0 }
 0x115   :  { %v139_v10 = vadd.f32 %v135_v9, %v59_v8  ;;  %v916_v11 = vpop.f32.mrb[1].mxu0  ;;  %v739_v9 = vld [vmem:[#allocation7 + $0x8] sm:$0xff] }
 0x117   :  { %1070 = vtanh.f32 %v139_v10  ;;  %v740_v10 = vld [vmem:[#allocation7 + $0x10] sm:$0xff] }
 0x121   :  { %v1071_v12 = vpop.eup %1070 }
 0x122   :  { %926 = vmatmul.mubr.msk.f32.vlgmr.msra.gmra.mrb[0].mxu1 %vm65_vm1, %v1071_v12  ;;  %v718_v25 = vrot.slane %v1071_v12, 1 }
 0x123   :  { %1025 = vmatpush3.bf16.msra.mxu1 %v1272_v5  ;;  %947 = vmatprep.mubr.msk.f32.mxu1 %vm1186_vm0, %v1187_v1 }
 0x124   :  { %1026 = vmatprep.subr.bf16.mxu1 %v1185_v0 }
 0x127   :  { %1028 = vmatpush3.bf16.msra.mxu1 %v1275_v7 }
 0x128   :  { %1035 = vmatprep.subr.bf16.mxu1 %v1185_v0 }
 0x1f5   :  { %v210_v13 = vpop.f32.mrb[0].mxu1 }
 0x1f6   :  { %v215_v14 = vrot.slane %v210_v13, 6  ;;  %v927_v15 = vpop.f32.mrb[1].mxu1 }
 0x1f8   :  { %v217_v16 = vadd.f32 %v215_v14, %v59_v8 }
 0x1fa   :  { %1072 = vtanh.f32 %v217_v16 }
 0x204   :  { %v1073_v17 = vpop.eup %1072 }
 0x205   :  { %v220_v18 = vrot.slane %v1073_v17, 2  ;;  %v689_v23 = vrot.slane %v1073_v17, 1 }
 0x207   :  { %937 = vmatmul.mubr.msk.f32.vlgmr.msra.gmra.mrb[2].mxu0 %vm65_vm1, %v220_v18  ;;  %v731_v29 = vsel %vm704_vm2, %v718_v25, %v220_v18  ;;  %v705_v30 = vsel %vm704_vm2, %v1071_v12, %v689_v23  ;;  %v741_v12 = vld [vmem:[#allocation7 + $0x18] sm:$0xff] }
 0x208   :  { %1031 = vmatpush3.bf16.msra.mxu0 %v1272_v5  ;;  %958 = vmatprep.mubr.msk.f32.mxu0 %vm1186_vm0, %v1187_v1  ;;  %v1057_v13 = vpack.c.bf16 %v741_v12, %v740_v10 }
 0x209   :  { %1032 = vmatprep.subr.bf16.mxu0 %v1185_v0 }
 0x20c   :  { %1034 = vmatpush3.bf16.msra.mxu0 %v1275_v7 }
 0x20d   :  { %1041 = vmatprep.subr.bf16.mxu0 %v1185_v0 }
 0x2da   :  { %v289_v19 = vpop.f32.mrb[2].mxu0 }
 0x2db   :  { %v294_v20 = vrot.slane %v289_v19, 4  ;;  %v938_v21 = vpop.f32.mrb[3].mxu0 }
 0x2dd   :  { %v296_v22 = vadd.f32 %v294_v20, %v59_v8 }
 0x2df   :  { %1074 = vtanh.f32 %v296_v22  ;;  %v857_v22 = vld [vmem:[%s1349_s3] ss:$0 sm:$0xff] }
 0x2e9   :  { %v1075_v24 = vpop.eup %1074 }
 0x2ea   :  { %v299_v26 = vrot.slane %v1075_v24, 4  ;;  %v691_v27 = vrot.slane %v1075_v24, 2  ;;  %v721_v28 = vrot.slane %v1075_v24, 3 }
 0x2ec   :  { %948 = vmatmul.mubr.msk.f32.vlgmr.msra.gmra.mrb[2].mxu1 %vm65_vm1, %v299_v26  ;;  %v707_v31 = vsel %vm706_vm3, %v705_v30, %v691_v27  ;;  %v732_v32 = vsel %vm706_vm3, %v731_v29, %v721_v28 }
 0x2ed   :  { %1037 = vmatpush3.bf16.msra.mxu1 %v1272_v5  ;;  %969 = vmatprep.mubr.msk.f32.mxu1 %vm1186_vm0, %v1187_v1 }
 0x2ee   :  { %1038 = vmatprep.subr.bf16.mxu1 %v1185_v0 }
 0x2f1   :  { %1040 = vmatpush3.bf16.msra.mxu1 %v1275_v7 }
 0x2f2   :  { %1047 = vmatprep.subr.bf16.mxu1 %v1185_v0 }
 0x3bf   :  { %v368_v33 = vpop.f32.mrb[2].mxu1 }
 0x3c0   :  { %v373_v34 = vrot.slane %v368_v33, 2  ;;  %v949_v35 = vpop.f32.mrb[3].mxu1 }
 0x3c2   :  { %v375_v36 = vadd.f32 %v373_v34, %v59_v8  ;;  %v738_v8 = vld [vmem:[#allocation7] sm:$0xff] }
 0x3c3   :  { %v1053_v11 = vpack.c.bf16 %v739_v9, %v738_v8 }
 0x3c4   :  { %1076 = vtanh.f32 %v375_v36 }
 0x3ce   :  { %v1077_v37 = vpop.eup %1076 }
 0x3cf   :  { %v378_v38 = vrot.slane %v1077_v37, 6  ;;  %v693_v39 = vrot.slane %v1077_v37, 3  ;;  %v723_v40 = vrot.slane %v1077_v37, 4 }
 0x3d1   :  { %959 = vmatmul.mubr.msk.f32.vlgmr.msra.gmra.mrb[4].mxu0 %vm65_vm1, %v378_v38  ;;  %v709_v41 = vsel %vm708_vm4, %v707_v31, %v693_v39  ;;  %v733_v42 = vsel %vm708_vm4, %v732_v32, %v723_v40 }
 0x3d2   :  { %1043 = vmatpush3.bf16.msra.mxu0 %v1272_v5  ;;  %980 = vmatprep.mubr.msk.f32.mxu0 %vm1186_vm0, %v1187_v1 }
 0x3d3   :  { %1044 = vmatprep.subr.bf16.mxu0 %v1185_v0 }
 0x3d6   :  { %1046 = vmatpush3.bf16.msra.mxu0 %v1275_v7 }
 0x3d7   :  { %1054 = vmatprep.subr.bf16.mxu0 %v1053_v11 }
 0x4a4   :  { %v447_v44 = vpop.f32.mrb[4].mxu0 }
 0x4a5   :  { %v451_v45 = vadd.f32 %v447_v44, %v60_v43  ;;  %v960_v46 = vpop.f32.mrb[5].mxu0 }
 0x4a7   :  { %1078 = vtanh.f32 %v451_v45 }
 0x4b1   :  { %v1079_v47 = vpop.eup %1078 }
 0x4b2   :  { %970 = vmatmul.mubr.msk.f32.vlgmr.msra.gmra.mrb[4].mxu1 %vm65_vm1, %v1079_v47  ;;  %v695_v48 = vrot.slane %v1079_v47, 4  ;;  %v725_v49 = vrot.slane %v1079_v47, 5 }
 0x4b3   :  { %1049 = vmatpush3.bf16.msra.mxu1 %v1272_v5  ;;  %991 = vmatprep.mubr.msk.f32.mxu1 %vm1186_vm0, %v1187_v1 }
 0x4b4   :  { %1050 = vmatprep.subr.bf16.mxu1 %v1185_v0  ;;  %v711_v50 = vsel %vm710_vm5, %v709_v41, %v695_v48  ;;  %v734_v51 = vsel %vm710_vm5, %v733_v42, %v725_v49 }
 0x4b7   :  { %1052 = vmatpush3.bf16.msra.mxu1 %v1275_v7 }
 0x585   :  { %v522_v52 = vpop.f32.mrb[4].mxu1 }
 0x586   :  { %v527_v53 = vrot.slane %v522_v52, 6  ;;  %v971_v54 = vpop.f32.mrb[5].mxu1 }
 0x588   :  { %v529_v55 = vadd.f32 %v527_v53, %v60_v43 }
 0x58a   :  { %1080 = vtanh.f32 %v529_v55 }
 0x594   :  { %v1081_v56 = vpop.eup %1080 }
 0x595   :  { %v532_v57 = vrot.slane %v1081_v56, 2  ;;  %v697_v58 = vrot.slane %v1081_v56, 5  ;;  %v727_v59 = vrot.slane %v1081_v56, 6 }
 0x597   :  { %981 = vmatmul.mubr.msk.f32.vlgmr.msra.gmra.mrb[6].mxu0 %vm65_vm1, %v532_v57  ;;  %v713_v60 = vsel %vm712_vm6, %v711_v50, %v697_v58  ;;  %v735_v61 = vsel %vm712_vm6, %v734_v51, %v727_v59 }
 0x598   :  { %1056 = vmatpush3.bf16.msra.mxu0 %v1053_v11 }
 0x599   :  { %1058 = vmatprep.subr.bf16.mxu0 %v1057_v13 }
 0x59c   :  { %1060 = vmatpush3.bf16.msra.mxu0 %v1057_v13 }
 0x66a   :  { %v601_v62 = vpop.f32.mrb[6].mxu0 }
 0x66b   :  { %v606_v63 = vrot.slane %v601_v62, 4  ;;  %v982_v0 = vpop.f32.mrb[7].mxu0 }
 0x66d   :  { %v608_v1 = vadd.f32 %v606_v63, %v60_v43 }
 0x66f   :  { %1082 = vtanh.f32 %v608_v1 }
 0x679   :  { %v1083_v2 = vpop.eup %1082 }
 0x67a   :  { %v611_v3 = vrot.slane %v1083_v2, 4  ;;  %v699_v4 = vrot.slane %v1083_v2, 6  ;;  %v729_v5 = vrot.slane %v1083_v2, 7 }
 0x67c   :  { %992 = vmatmul.mubr.msk.f32.vlgmr.msra.gmra.mrb[6].mxu1 %vm65_vm1, %v611_v3  ;;  %v715_v6 = vsel %vm714_vm7, %v713_v60, %v699_v4  ;;  %v736_v7 = vsel %vm714_vm7, %v735_v61, %v729_v5 }
 0x74f   :  { %v680_v14 = vpop.f32.mrb[6].mxu1 }
 0x750   :  { %v685_v15 = vrot.slane %v680_v14, 2  ;;  %v993_v16 = vpop.f32.mrb[7].mxu1 }
 0x752   :  { %v687_v17 = vadd.f32 %v685_v15, %v60_v43 }
 0x754   :  { %1084 = vtanh.f32 %v687_v17 }
 0x75e   :  { %v1085_v18 = vpop.eup %1084 }
 0x75f   :  { %v702_v19 = vrot.slane %v1085_v18, 7  ;;  %v737_v20 = vsel %vm716_vm8, %v736_v7, %v1085_v18 }
 0x761   :  { %v717_v21 = vsel %vm716_vm8, %v715_v6, %v702_v19 }
 0x762   :  { %1002 = vmatprep.mubr.msk.f32.mxu0 %vm65_vm1, %v717_v21 }
 0x763   :  { %1003 = vmatmul.mubr.msk.f32.vlgmr.msra.gmra.mrb[8].mxu0 %vm65_vm1, %v737_v20 }
 0x836   :  { %v1004_v23 = vpop.f32.mrb[8].mxu0 }
 0x837   :  { %v827_v24 = vadd.f32 %v1004_v23, %v857_v22  ;;  %v821_v25 = vpop.f32.mrb[9].mxu0 }
 0x838   :  { %v822_v26 = vadd.f32 %v857_v22, %v821_v25 }
 0x839   :  { %831 = vst [vmem:[#allocation8 + $0x8] sm:$0xff] %v827_v24 }
 0x83a   :  { %830 = vst [vmem:[#allocation8] sm:$0xff] %v822_v26 }
 0x83b   :  { %1163 = shalt.err (!%p1160_p0)
}
 0x83c   :  { %s1164_s3 = scalar_lea.hbm %s1350_s4, 256 }
 0x83d   :  { %p1165_p1 = scmp.ne.s32.totalorder %s1350_s4, %s1164_s3  ;;  %p1168_p2 = scmp.lt.u32.totalorder %s1164_s3, %s1350_s4 }
 0x83f   :  { %p1170_p3 = pnand %p1168_p2, %p1165_p1 }
 0x841   :  { %1173 = shalt.err (!%p1170_p3)
}
 0x842   :  { %843 = dma.vmem_to_hbm [thread:$0]  %s838_s29, 256, %s1350_s4, [#allocation4], %s1182_s27, %s1182_s27, %s1183_s28  }
 0x843   :  { %1178 = dma.done.wait [#allocation4], 256  }
 0x844   :  { %1179 = vsyncadd [#allocation4], 4294967040 }
 0x845   :  { %847 = vsyncpa [#allocation3], 1 }
 0x846   :  { %848 = vsyncpa [#allocation6], 1 }
 0x847   :  { %849 = vsyncpa [#allocation4], 1 }

</bundles_post_ra>
